<compile_context>
chip_gen: v5e
topology: v5e:2x2
jax: 0.10.0
libtpu: 0.0.40
codegen_flags: <defaults>
</compile_context>

<pallas_src>
import jax
import jax.numpy as jnp
from jax.experimental import pallas as pl
from jax.experimental.pallas import tpu as pltpu


def _testnet_kernel(coef_ref, xy_ref, out_ref):
    # coef_ref : SMEM (5,) f32           = [a0, a1, c0, c1, d]
    # xy_ref   : VMEM (4, br, 128) f32   = rows [x0, x1, y0, y1], batch on (sublane, lane)
    # out_ref  : VMEM (br, 128) f32      dense output slab
    a0 = coef_ref[0]
    a1 = coef_ref[1]
    c0 = coef_ref[2]
    c1 = coef_ref[3]
    d = coef_ref[4]

    out_ref[...] = (a0 * xy_ref[0]
                    + a1 * xy_ref[1]
                    + c0 * xy_ref[2]
                    + c1 * xy_ref[3]
                    + d)


def testnet_forward(x, y, params, *, block_rows=1024):
    """x, y: (B, 2) float32. params: dict of pre-transposed (in, out) weights/biases.

    Returns (B, 1) float32, matching TestNet.forward.
    block_rows: rows of 128 lanes per grid step (must be a multiple of 8 when it
    is smaller than the total number of rows).  1024 rows = 2 MiB input block.
    """
    B = x.shape[0]

    # ---- algebraic fold of the 4 Linear layers into one affine map ----
    A = 0.5 * (params["w1"] @ params["wo1"])                     # (2, 1)
    C = 0.5 * (params["w2"] @ params["wo2"])                     # (2, 1)
    d = 0.5 * ((params["b1"] + 5.0) @ params["wo1"] + params["bo1"]
               + params["b2"] @ params["wo2"] + params["bo2"])   # (1, 1)
    coef = jnp.concatenate(
        [A.reshape(-1), C.reshape(-1), d.reshape(-1)]).astype(jnp.float32)  # (5,)

    # ---- sublane+lane dense input slab: (4, R, 128), batch folded onto (R, 128) ----
    R = pl.cdiv(B, 128)
    b128 = R * 128
    xy = jnp.concatenate([x.T, y.T], axis=0).astype(jnp.float32)  # (4, B)
    if b128 != B:
        # pad only up to the next multiple of 128 (<= 127 elems); fuses under jit
        xy = jnp.pad(xy, ((0, 0), (0, b128 - B)))
    xy = xy.reshape(4, R, 128)

    # Single grid step for small batches; multi-MiB blocks + parallel grid otherwise.
    br = min(block_rows, R)
    grid = (pl.cdiv(R, br),)

    out = pl.pallas_call(
        _testnet_kernel,
        out_shape=jax.ShapeDtypeStruct((R, 128), jnp.float32),
        grid=grid,
        in_specs=[
            # 5 folded coefficients live in SMEM (untiled) — no VMEM DMAs for weights.
            pl.BlockSpec(memory_space=pltpu.MemorySpace.SMEM),
            # One (4, br, 128) dense input block per grid step.
            pl.BlockSpec((4, br, 128), lambda i: (0, i, 0)),
        ],
        out_specs=pl.BlockSpec((br, 128), lambda i: (i, 0)),
        compiler_params=pltpu.CompilerParams(
            dimension_semantics=("parallel",)),
    )(coef, xy)

    # back to the torch layout (B, 1) — pure reshape + slice, no transpose
    return out.reshape(-1)[:B].reshape(B, 1)


def init_params(key):
    """Deterministic init mimicking torch.nn.Linear default:
    U(-1/sqrt(fan_in), 1/sqrt(fan_in)). Weights stored transposed as (in, out)."""
    ks = jax.random.split(key, 8)

    def lin(kw, kb, fan_in, fan_out):
        bound = 1.0 / jnp.sqrt(jnp.float32(fan_in))
        w = jax.random.uniform(kw, (fan_in, fan_out), jnp.float32, -bound, bound)
        b = jax.random.uniform(kb, (1, fan_out), jnp.float32, -bound, bound)
        return w, b

    w1, b1 = lin(ks[0], ks[1], 2, 2)     # comm_m1
    w2, b2 = lin(ks[2], ks[3], 2, 2)     # comm_m2
    wo1, bo1 = lin(ks[4], ks[5], 2, 1)   # out_1
    wo2, bo2 = lin(ks[6], ks[7], 2, 1)   # out_2
    return {"w1": w1, "b1": b1, "w2": w2, "b2": b2,
            "wo1": wo1, "bo1": bo1, "wo2": wo2, "bo2": bo2}


def reference_forward(x, y, p):
    hx = x @ p["w1"] + p["b1"] + 5.0
    hy = y @ p["w2"] + p["b2"]
    ox = hx @ p["wo1"] + p["bo1"]
    oy = hy @ p["wo2"] + p["bo2"]
    return (ox + oy) / 2.0


if __name__ == "__main__":
    key = jax.random.PRNGKey(0)
    kp, kx, ky, kx2, ky2 = jax.random.split(key, 5)

    params = init_params(kp)

    # jit the whole wrapper so the input-prep transpose/concat/pad fuses into one copy
    fwd = jax.jit(lambda x, y: testnet_forward(x, y, params))

    # small batch (single grid step, one 128-lane row)
    B = 8
    x = jax.random.normal(kx, (B, 2), jnp.float32)
    y = jax.random.normal(ky, (B, 2), jnp.float32)
    out = jax.block_until_ready(fwd(x, y))
    ref = reference_forward(x, y, params)
    assert out.shape == (B, 1), out.shape
    assert jnp.allclose(out, ref, atol=1e-5, rtol=1e-5), (out, ref)

    # larger, non-multiple-of-128 batch (still a single grid step with br = R)
    B2 = 1037
    x2 = jax.random.normal(kx2, (B2, 2), jnp.float32)
    y2 = jax.random.normal(ky2, (B2, 2), jnp.float32)
    out2 = jax.block_until_ready(fwd(x2, y2))
    ref2 = reference_forward(x2, y2, params)
    assert out2.shape == (B2, 1), out2.shape
    assert jnp.allclose(out2, ref2, atol=1e-5, rtol=1e-5)

    # exercise the multi-step parallel grid + ragged final block path cheaply
    fwd_multi = jax.jit(lambda x, y: testnet_forward(x, y, params, block_rows=8))
    out3 = jax.block_until_ready(fwd_multi(x2, y2))
    assert out3.shape == (B2, 1), out3.shape
    assert jnp.allclose(out3, ref2, atol=1e-5, rtol=1e-5)

    print("KERNEL_OK")
</pallas_src>

<mosaic_0001>
module attributes {stable_mosaic.version = 11 : i64} {
  func.func @_testnet_kernel(%arg0: i32, %arg1: memref<5xf32, #tpu.memory_space<smem>>, %arg2: memref<4x1x128xf32, #tpu.memory_space<vmem>>, %arg3: memref<1x128xf32, #tpu.memory_space<vmem>>) attributes {dimension_semantics = [#tpu.dimension_semantics<parallel>], iteration_bounds = array<i64: 1>, scalar_prefetch = 0 : i64, scratch_operands = 0 : i64, tpu.core_type = #tpu.core_type<tc>, window_params = [{transform_indices = @transform_0, window_bounds = array<i64: 5>}, {transform_indices = @transform_1, window_bounds = array<i64: 4, 1, 128>}, {transform_indices = @transform_2, window_bounds = array<i64: 1, 128>}]} {
    %c0 = arith.constant 0 : index
    %0 = memref.load %arg1[%c0] : memref<5xf32, #tpu.memory_space<smem>>
    %c1 = arith.constant 1 : index
    %1 = memref.load %arg1[%c1] : memref<5xf32, #tpu.memory_space<smem>>
    %c2 = arith.constant 2 : index
    %2 = memref.load %arg1[%c2] : memref<5xf32, #tpu.memory_space<smem>>
    %c3 = arith.constant 3 : index
    %3 = memref.load %arg1[%c3] : memref<5xf32, #tpu.memory_space<smem>>
    %c4 = arith.constant 4 : index
    %4 = memref.load %arg1[%c4] : memref<5xf32, #tpu.memory_space<smem>>
    %c0_0 = arith.constant 0 : index
    %c0_1 = arith.constant 0 : index
    %c0_2 = arith.constant 0 : index
    %5 = vector.load %arg2[%c0_0, %c0_1, %c0_2] : memref<4x1x128xf32, #tpu.memory_space<vmem>>, vector<1x1x128xf32>
    %6 = vector.shape_cast %5 : vector<1x1x128xf32> to vector<1x128xf32>
    %7 = vector.broadcast %0 : f32 to vector<1x128xf32>
    %8 = arith.mulf %7, %6 : vector<1x128xf32>
    %c1_3 = arith.constant 1 : index
    %c0_4 = arith.constant 0 : index
    %c0_5 = arith.constant 0 : index
    %9 = vector.load %arg2[%c1_3, %c0_4, %c0_5] : memref<4x1x128xf32, #tpu.memory_space<vmem>>, vector<1x1x128xf32>
    %10 = vector.shape_cast %9 : vector<1x1x128xf32> to vector<1x128xf32>
    %11 = vector.broadcast %1 : f32 to vector<1x128xf32>
    %12 = arith.mulf %11, %10 : vector<1x128xf32>
    %13 = arith.addf %8, %12 : vector<1x128xf32>
    %c2_6 = arith.constant 2 : index
    %c0_7 = arith.constant 0 : index
    %c0_8 = arith.constant 0 : index
    %14 = vector.load %arg2[%c2_6, %c0_7, %c0_8] : memref<4x1x128xf32, #tpu.memory_space<vmem>>, vector<1x1x128xf32>
    %15 = vector.shape_cast %14 : vector<1x1x128xf32> to vector<1x128xf32>
    %16 = vector.broadcast %2 : f32 to vector<1x128xf32>
    %17 = arith.mulf %16, %15 : vector<1x128xf32>
    %18 = arith.addf %13, %17 : vector<1x128xf32>
    %c3_9 = arith.constant 3 : index
    %c0_10 = arith.constant 0 : index
    %c0_11 = arith.constant 0 : index
    %19 = vector.load %arg2[%c3_9, %c0_10, %c0_11] : memref<4x1x128xf32, #tpu.memory_space<vmem>>, vector<1x1x128xf32>
    %20 = vector.shape_cast %19 : vector<1x1x128xf32> to vector<1x128xf32>
    %21 = vector.broadcast %3 : f32 to vector<1x128xf32>
    %22 = arith.mulf %21, %20 : vector<1x128xf32>
    %23 = arith.addf %18, %22 : vector<1x128xf32>
    %24 = vector.broadcast %4 : f32 to vector<1x128xf32>
    %25 = arith.addf %23, %24 : vector<1x128xf32>
    %c0_12 = arith.constant 0 : index
    %c0_13 = arith.constant 0 : index
    %26 = vector.load %arg3[%c0_12, %c0_13] : memref<1x128xf32, #tpu.memory_space<vmem>>, vector<1x128xf32>
    tpu.vector_store %arg3[%c0_12, %c0_13], %25 {strides = array<i32>} : memref<1x128xf32, #tpu.memory_space<vmem>>, vector<1x128xf32>,
    return
  }
  func.func @transform_0(%arg0: i32) -> i32 {
    %c0_i32 = arith.constant 0 : i32
    %c0_i32_0 = arith.constant 0 : i32
    return %c0_i32 : i32
  }
  func.func @transform_1(%arg0: i32) -> (i32, i32, i32) {
    %c0_i32 = arith.constant 0 : i32
    %c0_i32_0 = arith.constant 0 : i32
    %c0_i32_1 = arith.constant 0 : i32
    return %c0_i32, %arg0, %c0_i32_0 : i32, i32, i32
  }
  func.func @transform_2(%arg0: i32) -> (i32, i32) {
    %c0_i32 = arith.constant 0 : i32
    %c0_i32_0 = arith.constant 0 : i32
    return %arg0, %c0_i32 : i32, i32
  }
}

</mosaic_0001>

<bundles_post_ra>
// kernel: _lambda_.1
= control target key start
LH: loop header
LB: loop body
LE: loop exit
PB: predicated region body
PF: predicated region fallthrough
CT: control target
= control target key end

     0   :  { %7 = vsyncpa [#allocation3], 0  ;;  %s77_s12 = smov [#allocation2]   ;;  %s111_s0 = inlined_call_operand.vmem [shape: f32[5], index: 0, kind: input, shape index: {}]   ;;  %s112_s1 = inlined_call_operand.vmem [shape: f32[4,1,128], index: 1, kind: input, shape index: {}]   ;;  %s113_s2 = inlined_call_operand.vmem [shape: f32[1,128], index: 2, kind: output, shape index: {}]  }
   0x1   :  { %s13_s11 = sshll.u32 %s111_s0, 4  ;;  %s14_s11 = int_to_ptr.vmem [resolvable:$true] %s13_s11 }
   0x2   :  { %16 = dma.vmem_to_smem %s14_s11, 16, %s77_s12, [#allocation3]  }
   0x3   :  { %75 = dma.done.wait [#allocation3], 16  }
   0x4   :  { %76 = vsyncadd [#allocation3], 4294967280 }
   0x5   :  { %23 = sfence }
   0x6   :  { %s24_s13 = sld [smem:[#allocation2]]  ;;  %v29_v0 = vld [vmem:[%s112_s1] sm:$0x1]  ;;  %v59_v1 = vld [vmem:[%s112_s1 + $0x1] sm:$0x1] }
   0x7   :  { %s55_s14 = sld [smem:[#allocation2 + $0x1]]  ;;  %v60_v3 = vld [vmem:[%s112_s1 + $0x2] sm:$0x1]  ;;  %v61_v6 = vld [vmem:[%s112_s1 + $0x3] sm:$0x1] }
   0x8   :  { %s56_s15 = sld [smem:[#allocation2 + $0x2]] }
   0x9   :  { %s57_s16 = sld [smem:[#allocation2 + $0x3]] }
   0xa   :  { %s58_s19 = sld [smem:[#allocation2 + $0x4]] }
   0xc   :  { %v30_v2 = vstv %s24_s13 }
   0xd   :  { %v31_v4 = vmul.f32 %v30_v2, %v29_v0  ;;  %v34_v5 = vstv %s55_s14 }
   0xe   :  { %v35_v7 = vmul.f32 %v59_v1, %v34_v5  ;;  %v39_v8 = vstv %s56_s15 }
   0xf   :  { %v40_v9 = vmul.f32 %v60_v3, %v39_v8  ;;  %v44_v10 = vstv %s57_s16 }
  0x10   :  { %v36_v11 = vadd.f32 %v35_v7, %v31_v4  ;;  %v45_v12 = vmul.f32 %v61_v6, %v44_v10  ;;  %v47_v14 = vstv %s58_s19 }
  0x12   :  { %v41_v13 = vadd.f32 %v40_v9, %v36_v11 }
  0x14   :  { %v46_v15 = vadd.f32 %v45_v12, %v41_v13 }
  0x16   :  { %v48_v16 = vadd.f32 %v47_v14, %v46_v15 }
  0x18   :  { %49 = vst [vmem:[%s113_s2] sm:$0x1] %v48_v16 }
  0x19   :  { %54 = vsyncpa [#allocation3], 1 }

</bundles_post_ra>
